<compile_context>
chip_gen: v6e
topology: v6e:2x2x1
jax: 0.10.0
libtpu: 0.0.40
codegen_flags: <defaults>
</compile_context>

<pallas_src>
import functools
import math

import jax
import jax.numpy as jnp
from jax.experimental import pallas as pl
from jax.experimental.pallas import tpu as pltpu

EPS = 0.2
LOG_2PI = math.log(2.0 * math.pi)
LANES = 128
MAX_TILE_ROWS = 1024  # ~8 MiB double-buffered per step -> safe on v5e/v6e/v7x


def _round_up(x, m):
    return (x + m - 1) // m * m


def _loss_tile(s_ref):
    """s_ref: (7, tile_rows, 128) stacked planes
    [Sigma00, Sigma10, Sigma11, mean_x, mean_y, gt_x, gt_y] in input dtype."""
    f32 = jnp.float32
    # Cast after the load (halves DMA bytes for bf16 inputs; cast hides under DMA).
    a = s_ref[0].astype(f32) + EPS
    b = s_ref[1].astype(f32)          # Sigma[1,0]: matches torch Cholesky-lower
    c = s_ref[2].astype(f32) + EPS
    dx = s_ref[5].astype(f32) - s_ref[3].astype(f32)
    dy = s_ref[6].astype(f32) - s_ref[4].astype(f32)
    # Closed-form 2x2 determinant / inverse (no Cholesky):
    #   det   = (S00+eps)(S11+eps) - S10^2                (>= eps^2 for PSD Sigma)
    #   maha  = (c*dx^2 - 2*b*dx*dy + a*dy^2) / det
    #   -logp = 0.5*maha + log(2*pi) + 0.5*log(det)
    det = a * c - b * b
    inv_det = pl.reciprocal(det)      # exact; det bounded away from 0 by eps^2
    maha = (c * dx * dx - 2.0 * b * dx * dy + a * dy * dy) * inv_det
    return 0.5 * maha + LOG_2PI + 0.5 * jnp.log(det)


def _gnll_map_kernel(s_ref, loss_ref):
    loss_ref[...] = _loss_tile(s_ref)


def _gnll_mean_kernel(tile_rows, s_ref, partial_ref):
    loss = _loss_tile(s_ref)
    # Fold this tile's rows into an aligned (8, 128) partial-sum slab
    # (unmasked lane-dense store; no cross-step dependency -> axis stays "parallel").
    # Padded elements are NOT masked here; their exact constant contribution is
    # subtracted once in the wrapper.
    partial_ref[...] = jnp.sum(loss.reshape(tile_rows // 8, 8, LANES), axis=0)


def gnll_loss(trajectory, trajectory_cov, trajectory_ground_truth,
              reduction="mean", tile_rows=None):
    """trajectory: [B, T, D>=2], trajectory_cov: [B, T, D>=2, D>=2],
    trajectory_ground_truth: [B, T, D>=2]."""
    B, T = trajectory.shape[0], trajectory.shape[1]
    n = B * T

    # Glue (outside the kernel): slice out the xy / 2x2 components and pack
    # them into ONE slab in the input dtype (single fused XLA stack+pad write
    # the kernel reads directly; no f32 upcast here).
    # TODO(synk): if the producer can emit contiguous Sigma00/10/11/mean/gt
    # planes, the strided cov[..., i, j] gathers (which force XLA to stream the
    # full [B, T, D, D] cov) disappear entirely -- that is the remaining
    # wrapper-side HBM cost.
    planes = jnp.stack([
        trajectory_cov[..., 0, 0].reshape(-1),
        trajectory_cov[..., 1, 0].reshape(-1),
        trajectory_cov[..., 1, 1].reshape(-1),
        trajectory[..., 0].reshape(-1),
        trajectory[..., 1].reshape(-1),
        trajectory_ground_truth[..., 0].reshape(-1),
        trajectory_ground_truth[..., 1].reshape(-1),
    ], axis=0)

    rows = pl.cdiv(n, LANES)
    rows8 = _round_up(max(rows, 1), 8)
    if tile_rows is None:
        # >= 2 tiles when there is enough work (keeps v7x's 2nd TensorCore
        # busy), <= MAX_TILE_ROWS per tile (VMEM-safe with double buffering),
        # and a boundary derived from rows8 so padding is at most 7 rows.
        want_tiles = max(2, pl.cdiv(rows8, MAX_TILE_ROWS))
        tile_rows = _round_up(pl.cdiv(rows8, want_tiles), 8)
    tile_rows = max(8, _round_up(tile_rows, 8))
    padded_rows = _round_up(rows8, tile_rows)
    num_tiles = padded_rows // tile_rows

    pad = padded_rows * LANES - n
    if pad:
        planes = jnp.pad(planes, ((0, 0), (0, pad)))
    slab = planes.reshape(7, padded_rows, LANES)

    in_specs = [pl.BlockSpec((7, tile_rows, LANES), lambda i: (0, i, 0))]
    params = pltpu.CompilerParams(dimension_semantics=("parallel",))

    if reduction == "mean":
        # Mean path: no full loss-map write, only per-tile partial sums.
        partials = pl.pallas_call(
            functools.partial(_gnll_mean_kernel, tile_rows),
            out_shape=jax.ShapeDtypeStruct((num_tiles * 8, LANES), jnp.float32),
            grid=(num_tiles,),
            in_specs=in_specs,
            out_specs=pl.BlockSpec((8, LANES), lambda i: (i, 0)),
            compiler_params=params,
        )(slab)
        total = jnp.sum(partials)
        if pad:
            # Every zero-padded element contributes exactly
            # LOG_2PI + 0.5*log(EPS^2); subtract instead of masking in-kernel.
            det0 = jnp.float32(EPS) * jnp.float32(EPS)
            pad_loss = jnp.float32(LOG_2PI) + 0.5 * jnp.log(det0)
            total = total - pad * pad_loss
        return total / B / T

    loss_flat = pl.pallas_call(
        _gnll_map_kernel,
        out_shape=jax.ShapeDtypeStruct((padded_rows, LANES), jnp.float32),
        grid=(num_tiles,),
        in_specs=in_specs,
        out_specs=pl.BlockSpec((tile_rows, LANES), lambda i: (i, 0)),
        compiler_params=params,
    )(slab)
    return loss_flat.reshape(-1)[:n].reshape(B, T)


def _reference(trajectory, trajectory_cov, trajectory_ground_truth,
               reduction="mean"):
    """Pure-JAX reference (mirrors the torch module)."""
    B, T = trajectory.shape[0], trajectory.shape[1]
    sigma = trajectory_cov[..., :2, :2] + EPS * jnp.eye(2, dtype=jnp.float32)
    L = jnp.linalg.cholesky(sigma)
    diff = (trajectory_ground_truth[..., :2] - trajectory[..., :2])[..., None]
    z = jax.scipy.linalg.solve_triangular(L, diff, lower=True)[..., 0]
    maha = jnp.sum(z * z, axis=-1)
    logdet = jnp.log(L[..., 0, 0]) + jnp.log(L[..., 1, 1])
    loss = 0.5 * maha + LOG_2PI + logdet
    if reduction == "mean":
        return jnp.sum(loss) / B / T
    return loss


if __name__ == "__main__":
    key = jax.random.PRNGKey(0)
    k1, k2, k3, k4, k5, k6 = jax.random.split(key, 6)

    # Case 1: tiny shapes consistent with the module (B=2, T=8, D=4).
    B, T, D = 2, 8, 4
    traj = jax.random.normal(k1, (B, T, D), dtype=jnp.float32)
    gt = jax.random.normal(k2, (B, T, D), dtype=jnp.float32)
    A = 0.5 * jax.random.normal(k3, (B, T, D, D), dtype=jnp.float32)
    cov = jnp.einsum("btij,btkj->btik", A, A)  # symmetric PSD per (B, T)

    out_mean = gnll_loss(traj, cov, gt, reduction="mean")
    out_none = gnll_loss(traj, cov, gt, reduction="none")
    jax.block_until_ready((out_mean, out_none))
    assert jnp.allclose(out_mean, _reference(traj, cov, gt, "mean"),
                        atol=1e-4, rtol=1e-3)
    assert jnp.allclose(out_none, _reference(traj, cov, gt, "none"),
                        atol=1e-4, rtol=1e-3)

    # Case 2: exercises multi-tile grid + pad correction (forced small tile).
    B2, T2, D2 = 4, 500, 3
    traj2 = jax.random.normal(k4, (B2, T2, D2), dtype=jnp.float32)
    gt2 = jax.random.normal(k5, (B2, T2, D2), dtype=jnp.float32)
    A2 = 0.5 * jax.random.normal(k6, (B2, T2, D2, D2), dtype=jnp.float32)
    cov2 = jnp.einsum("btij,btkj->btik", A2, A2)

    out_mean2 = gnll_loss(traj2, cov2, gt2, reduction="mean", tile_rows=8)
    out_none2 = gnll_loss(traj2, cov2, gt2, reduction="none", tile_rows=8)
    jax.block_until_ready((out_mean2, out_none2))
    assert jnp.allclose(out_mean2, _reference(traj2, cov2, gt2, "mean"),
                        atol=1e-4, rtol=1e-3)
    assert jnp.allclose(out_none2, _reference(traj2, cov2, gt2, "none"),
                        atol=1e-4, rtol=1e-3)

    # Case 3: default adaptive tiling on the same medium shape (>= 2 tiles).
    out_mean3 = gnll_loss(traj2, cov2, gt2, reduction="mean")
    out_none3 = gnll_loss(traj2, cov2, gt2, reduction="none")
    jax.block_until_ready((out_mean3, out_none3))
    assert jnp.allclose(out_mean3, _reference(traj2, cov2, gt2, "mean"),
                        atol=1e-4, rtol=1e-3)
    assert jnp.allclose(out_none3, _reference(traj2, cov2, gt2, "none"),
                        atol=1e-4, rtol=1e-3)

    print("KERNEL_OK")
</pallas_src>

<mosaic_0001>
module attributes {stable_mosaic.version = 11 : i64} {
  func.func @_gnll_mean_kernel(%arg0: i32, %arg1: memref<7x8x128xf32, #tpu.memory_space<vmem>>, %arg2: memref<8x128xf32, #tpu.memory_space<vmem>>) attributes {dimension_semantics = [#tpu.dimension_semantics<parallel>], iteration_bounds = array<i64: 1>, scalar_prefetch = 0 : i64, scratch_operands = 0 : i64, tpu.core_type = #tpu.core_type<tc>, window_params = [{transform_indices = @transform_0, window_bounds = array<i64: 7, 8, 128>}, {transform_indices = @transform_1, window_bounds = array<i64: 8, 128>}]} {
    %c0 = arith.constant 0 : index
    %c0_0 = arith.constant 0 : index
    %c0_1 = arith.constant 0 : index
    %0 = vector.load %arg1[%c0, %c0_0, %c0_1] : memref<7x8x128xf32, #tpu.memory_space<vmem>>, vector<1x8x128xf32>
    %1 = vector.shape_cast %0 : vector<1x8x128xf32> to vector<8x128xf32>
    %cst = arith.constant 2.000000e-01 : f32
    %2 = vector.broadcast %cst : f32 to vector<8x128xf32>
    %3 = arith.addf %1, %2 : vector<8x128xf32>
    %c1 = arith.constant 1 : index
    %c0_2 = arith.constant 0 : index
    %c0_3 = arith.constant 0 : index
    %4 = vector.load %arg1[%c1, %c0_2, %c0_3] : memref<7x8x128xf32, #tpu.memory_space<vmem>>, vector<1x8x128xf32>
    %5 = vector.shape_cast %4 : vector<1x8x128xf32> to vector<8x128xf32>
    %c2 = arith.constant 2 : index
    %c0_4 = arith.constant 0 : index
    %c0_5 = arith.constant 0 : index
    %6 = vector.load %arg1[%c2, %c0_4, %c0_5] : memref<7x8x128xf32, #tpu.memory_space<vmem>>, vector<1x8x128xf32>
    %7 = vector.shape_cast %6 : vector<1x8x128xf32> to vector<8x128xf32>
    %cst_6 = arith.constant 2.000000e-01 : f32
    %8 = vector.broadcast %cst_6 : f32 to vector<8x128xf32>
    %9 = arith.addf %7, %8 : vector<8x128xf32>
    %c5 = arith.constant 5 : index
    %c0_7 = arith.constant 0 : index
    %c0_8 = arith.constant 0 : index
    %10 = vector.load %arg1[%c5, %c0_7, %c0_8] : memref<7x8x128xf32, #tpu.memory_space<vmem>>, vector<1x8x128xf32>
    %11 = vector.shape_cast %10 : vector<1x8x128xf32> to vector<8x128xf32>
    %c3 = arith.constant 3 : index
    %c0_9 = arith.constant 0 : index
    %c0_10 = arith.constant 0 : index
    %12 = vector.load %arg1[%c3, %c0_9, %c0_10] : memref<7x8x128xf32, #tpu.memory_space<vmem>>, vector<1x8x128xf32>
    %13 = vector.shape_cast %12 : vector<1x8x128xf32> to vector<8x128xf32>
    %14 = arith.subf %11, %13 : vector<8x128xf32>
    %c6 = arith.constant 6 : index
    %c0_11 = arith.constant 0 : index
    %c0_12 = arith.constant 0 : index
    %15 = vector.load %arg1[%c6, %c0_11, %c0_12] : memref<7x8x128xf32, #tpu.memory_space<vmem>>, vector<1x8x128xf32>
    %16 = vector.shape_cast %15 : vector<1x8x128xf32> to vector<8x128xf32>
    %c4 = arith.constant 4 : index
    %c0_13 = arith.constant 0 : index
    %c0_14 = arith.constant 0 : index
    %17 = vector.load %arg1[%c4, %c0_13, %c0_14] : memref<7x8x128xf32, #tpu.memory_space<vmem>>, vector<1x8x128xf32>
    %18 = vector.shape_cast %17 : vector<1x8x128xf32> to vector<8x128xf32>
    %19 = arith.subf %16, %18 : vector<8x128xf32>
    %20 = arith.mulf %3, %9 : vector<8x128xf32>
    %21 = arith.mulf %5, %5 : vector<8x128xf32>
    %22 = arith.subf %20, %21 : vector<8x128xf32>
    %23 = tpu.reciprocal %22 : vector<8x128xf32> -> vector<8x128xf32>
    %24 = arith.mulf %9, %14 : vector<8x128xf32>
    %25 = arith.mulf %24, %14 : vector<8x128xf32>
    %cst_15 = arith.constant 2.000000e+00 : f32
    %26 = vector.broadcast %cst_15 : f32 to vector<8x128xf32>
    %27 = arith.mulf %26, %5 : vector<8x128xf32>
    %28 = arith.mulf %27, %14 : vector<8x128xf32>
    %29 = arith.mulf %28, %19 : vector<8x128xf32>
    %30 = arith.subf %25, %29 : vector<8x128xf32>
    %31 = arith.mulf %3, %19 : vector<8x128xf32>
    %32 = arith.mulf %31, %19 : vector<8x128xf32>
    %33 = arith.addf %30, %32 : vector<8x128xf32>
    %34 = arith.mulf %33, %23 : vector<8x128xf32>
    %cst_16 = arith.constant 5.000000e-01 : f32
    %35 = vector.broadcast %cst_16 : f32 to vector<8x128xf32>
    %36 = arith.mulf %35, %34 : vector<8x128xf32>
    %cst_17 = arith.constant 1.83787704 : f32
    %37 = vector.broadcast %cst_17 : f32 to vector<8x128xf32>
    %38 = arith.addf %36, %37 : vector<8x128xf32>
    %39 = math.log %22 : vector<8x128xf32>
    %cst_18 = arith.constant 5.000000e-01 : f32
    %40 = vector.broadcast %cst_18 : f32 to vector<8x128xf32>
    %41 = arith.mulf %40, %39 : vector<8x128xf32>
    %42 = arith.addf %38, %41 : vector<8x128xf32>
    %43 = vector.shape_cast %42 : vector<8x128xf32> to vector<1x8x128xf32>
    %cst_19 = arith.constant dense<0.000000e+00> : vector<8x128xf32>
    %44 = vector.multi_reduction <add>, %43, %cst_19 [0] : vector<1x8x128xf32> to vector<8x128xf32>
    %c0_20 = arith.constant 0 : index
    %c0_21 = arith.constant 0 : index
    %45 = vector.load %arg2[%c0_20, %c0_21] : memref<8x128xf32, #tpu.memory_space<vmem>>, vector<8x128xf32>
    tpu.vector_store %arg2[%c0_20, %c0_21], %44 {strides = array<i32>} : memref<8x128xf32, #tpu.memory_space<vmem>>, vector<8x128xf32>,
    return
  }
  func.func @transform_0(%arg0: i32) -> (i32, i32, i32) {
    %c0_i32 = arith.constant 0 : i32
    %c0_i32_0 = arith.constant 0 : i32
    %c0_i32_1 = arith.constant 0 : i32
    return %c0_i32, %arg0, %c0_i32_0 : i32, i32, i32
  }
  func.func @transform_1(%arg0: i32) -> (i32, i32) {
    %c0_i32 = arith.constant 0 : i32
    %c0_i32_0 = arith.constant 0 : i32
    return %arg0, %c0_i32 : i32, i32
  }
}

</mosaic_0001>

<bundles_post_ra>
// kernel: tpu_custom_call.1
= control target key start
LH: loop header
LB: loop body
LE: loop exit
PB: predicated region body
PF: predicated region fallthrough
CT: control target
= control target key end

     0   :  { %6 = vsyncpa [#allocation3], 0  ;;  %s149_s0 = inlined_call_operand.hbm [shape: f32[7,8,128], index: 0, kind: input, shape index: {}]   ;;  %s150_s1 = inlined_call_operand.hbm [shape: f32[8,128], index: 1, kind: output, shape index: {}]  }
   0x1   :  { %7 = vsyncpa [#allocation4], 0  ;;  %s129_s6 = smov [#allocation2]  }
   0x2   :  { %s13_s7 = sshll.u32 %s129_s6, 4  ;;  %s14_s7 = int_to_ptr.vmem [resolvable:$true] %s13_s7 }
   0x3   :  { %s93_s8 = scalar_lea.vmem %s14_s7, 896  ;;  %p98_p1 = scmp.lt.s32.totalorder %s14_s7, %s14_s7 }
   0x4   :  { %p94_p0 = scmp.ne.s32.totalorder %s14_s7, %s93_s8  ;;  %p99_p2 = scmp.lt.s32.totalorder %s93_s8, %s93_s8 }
   0x6   :  { %p100_p3 = por %p99_p2, %p98_p1 }
   0x8   :  { %p101_p4 = pnand %p100_p3, %p94_p0 }
   0xa   :  { %104 = shalt.err (!%p101_p4)
}
   0xb   :  { %s130_s9 = smov 128   ;;  %s131_s10 = smov 8  }
   0xc   :  { %19 = dma.hbm_to_vmem [thread:$0]  %s149_s0, 896, %s14_s7, [#allocation3], %s130_s9, %s130_s9, %s131_s10  }
   0xd   :  { %125 = dma.done.wait [#allocation3], 896  }
   0xe   :  { %126 = vsyncadd [#allocation3], 4294966400  ;;  %v23_v0 = vld [vmem:[#allocation2] sm:$0xff]  ;;  %v26_v1 = vld [vmem:[#allocation2 + $0x8] sm:$0xff]  ;;  %s132_s0 = smov [#allocation5]  }
   0xf   :  { %v28_v2 = vld [vmem:[#allocation2 + $0x10] sm:$0xff]  ;;  %v24_v3 = vadd.f32 0.2, %v23_v0  ;;  %v31_v5 = vld [vmem:[#allocation2 + $0x28] sm:$0xff]  ;;  %v33_v6 = vld [vmem:[#allocation2 + $0x18] sm:$0xff]  ;;  %v41_v7 = vmul.f32 %v26_v1, %v26_v1  ;;  %v46_v11 = vmul.f32 2.0, %v26_v1 }
  0x10   :  { %v29_v4 = vadd.f32 0.2, %v28_v2  ;;  %v34_v8 = vsub.f32 %v31_v5, %v33_v6  ;;  %v36_v9 = vld [vmem:[#allocation2 + $0x30] sm:$0xff]  ;;  %v38_v10 = vld [vmem:[#allocation2 + $0x20] sm:$0xff]  ;;  %s68_s13 = sshll.u32 %s132_s0, 4  ;;  %s69_s13 = int_to_ptr.vmem [resolvable:$true] %s68_s13 }
  0x11   :  { %v39_v13 = vsub.f32 %v36_v9, %v38_v10  ;;  %s105_s14 = scalar_lea.vmem %s69_s13, 128  ;;  %p110_p6 = scmp.lt.s32.totalorder %s69_s13, %s69_s13 }
  0x12   :  { %v40_v12 = vmul.f32 %v29_v4, %v24_v3  ;;  %v44_v15 = vmul.f32 %v34_v8, %v29_v4  ;;  %v47_v16 = vmul.f32 %v46_v11, %v34_v8  ;;  %p106_p5 = scmp.ne.s32.totalorder %s69_s13, %s105_s14  ;;  %p111_p7 = scmp.lt.s32.totalorder %s105_s14, %s105_s14 }
  0x13   :  { %v50_v19 = vmul.f32 %v39_v13, %v24_v3 }
  0x14   :  { %v42_v14 = vsub.f32 %v40_v12, %v41_v7  ;;  %v45_v17 = vmul.f32 %v44_v15, %v34_v8  ;;  %v48_v18 = vmul.f32 %v47_v16, %v39_v13  ;;  %p112_p8 = por %p111_p7, %p110_p6 }
  0x15   :  { %v51_v21 = vmul.f32 %v50_v19, %v39_v13 }
  0x16   :  { %81 = vrcp.f32 %v42_v14  ;;  %v49_v20 = vsub.f32 %v45_v17, %v48_v18  ;;  %p113_p9 = pnand %p112_p8, %p106_p5 }
  0x17   :  { %83 = vlog2.f32 %v42_v14 }
  0x18   :  { %v52_v22 = vadd.f32 %v51_v21, %v49_v20 }
  0x23   :  { %v82_v23 = vpop.eup %81 }
  0x24   :  { %v84_v24 = vpop.eup %83  ;;  %v53_v25 = vmul.f32 %v82_v23, %v52_v22 }
  0x25   :  { %v57_v26 = vmul.f32 0.6931472, %v84_v24 }
  0x26   :  { %v54_v27 = vmul.f32 0.5, %v53_v25 }
  0x27   :  { %v58_v28 = vmul.f32 0.5, %v57_v26 }
  0x28   :  { %v55_v29 = vadd.f32 1.837877, %v54_v27 }
  0x2a   :  { %v59_v30 = vadd.f32 %v58_v28, %v55_v29 }
  0x2c   :  { %61 = vst [vmem:[#allocation5] sm:$0xff] %v59_v30 }
  0x2d   :  { %116 = shalt.err (!%p113_p9)
}
  0x2e   :  { %71 = dma.vmem_to_hbm [thread:$0]  %s69_s13, 128, %s150_s1, [#allocation4]  }
  0x2f   :  { %127 = dma.done.wait [#allocation4], 128  }
  0x30   :  { %128 = vsyncadd [#allocation4], 4294967168 }
  0x31   :  { %75 = vsyncpa [#allocation3], 1 }
  0x32   :  { %76 = vsyncpa [#allocation4], 1 }

</bundles_post_ra>
